<compile_context>
chip_gen: v7x
topology: tpu7x:2x2x1
jax: 0.10.0
libtpu: 0.0.40
codegen_flags: <defaults>
</compile_context>

<pallas_src>
import math

import jax
import jax.numpy as jnp
from jax.experimental import pallas as pl
from jax.experimental.pallas import tpu as pltpu


_LANE_TILE = 1024                        # initial lane-tile cap (mult of 128)
_SUB_TILE_MAX = 1024                     # max sublane tile (mult of 128)
_TARGET_BLOCK_BYTES = 2 * 1024 * 1024    # ~2 MiB per block (perf review)
_VMEM_HEADROOM = 16 * 1024 * 1024

_VMEM_CAP_CACHE = None


def _vmem_capacity_bytes():
    """Physical VMEM of the current TPU generation (conservative fallback)."""
    global _VMEM_CAP_CACHE
    if _VMEM_CAP_CACHE is None:
        cap = None
        try:
            info = pltpu.get_tpu_info()
            for name in ("vmem_capacity_bytes", "vmem_size_bytes", "vmem_bytes"):
                val = getattr(info, name, None)
                if val:
                    cap = int(val)
                    break
        except Exception:
            cap = None
        # Conservative default = v7x (64 MiB) so we never over-allocate.
        _VMEM_CAP_CACHE = cap if cap else 64 * 1024 * 1024
    return _VMEM_CAP_CACHE


def _small_bytes_threshold():
    # Below this a standalone pallas_call is dominated by launch / pipeline
    # prologue; let XLA fuse the transpose into neighbours instead.  High-HBM
    # generations (v7x, detected via its 64 MiB VMEM) need a larger array
    # before a standalone kernel pays off.
    return (1 << 20) if _vmem_capacity_bytes() <= (64 << 20) else (512 << 10)


def _pick_sub_tile(extent, lane_width, itemsize):
    """Sublane tile: full extent, or a multiple of 128 sized toward the block
    byte target (multiples of 128 are legal wherever they land on the input
    side, and keep input DMA rows >= 512 B even on v5e)."""
    cap = _TARGET_BLOCK_BYTES // max(1, lane_width * itemsize)
    cap = max(128, min(_SUB_TILE_MAX, (cap // 128) * 128))
    return extent if extent <= cap else cap


def _simplify_permutation(shape, dim):
    """Drop size-1 axes and merge runs of input axes that remain adjacent and
    in order under the permutation.  Returns (new_input_shape, new_dim); the
    reshapes into/out of this representation are free row-major reshapes."""
    ndim = len(shape)
    keep = [i for i in range(ndim) if shape[i] != 1]
    if not keep:
        return (1,), (0,)
    old2new = {old: n for n, old in enumerate(keep)}
    shape1 = [shape[i] for i in keep]
    dim1 = [old2new[d] for d in dim if d in old2new]

    groups = []  # runs of input axes, listed in output order
    for d in dim1:
        if groups and d == groups[-1][-1] + 1:
            groups[-1].append(d)
        else:
            groups.append([d])

    order = sorted(range(len(groups)), key=lambda g: groups[g][0])  # input order
    inp_rank = {g: k for k, g in enumerate(order)}
    new_shape = tuple(math.prod(shape1[i] for i in groups[g]) for g in order)
    new_dim = tuple(inp_rank[g] for g in range(len(groups)))
    return new_shape, new_dim


def _copy_kernel(x_ref, o_ref):
    # Pure DMA re-layout: the permutation only moves block axes of size 1, so
    # the resident block is bit-identical; no in-register transpose needed.
    o_ref[...] = x_ref[...]


def _make_transpose_kernel(perm):
    def kernel(x_ref, o_ref):
        o_ref[...] = jnp.transpose(x_ref[...], perm)
    return kernel


def _permute_core(x, dim):
    """Tiled pallas permute of a simplified (no size-1, no mergeable-run)
    permutation with ndim >= 2.  Returns None if no block fits VMEM."""
    ndim = x.ndim
    shape = tuple(int(s) for s in x.shape)
    itemsize = x.dtype.itemsize
    out_shape = tuple(shape[d] for d in dim)
    inv = tuple(dim.index(i) for i in range(ndim))  # output position of input axis i

    # ---- block-shape selection (output-axis ordered) -----------------------
    blk_out = [1] * ndim
    blk_out[ndim - 1] = (out_shape[-1] if out_shape[-1] <= _LANE_TILE
                         else _LANE_TILE)
    blk_out[ndim - 2] = _pick_sub_tile(out_shape[-2], blk_out[ndim - 1], itemsize)

    blk_in = [1] * ndim
    for o in range(ndim):
        blk_in[dim[o]] = blk_out[o]

    # Input trailing-two block dims must be (8,128)-aligned or the full
    # extent.  A leading output axis (block 1) landing there is widened to
    # full extent on both sides.
    for i, mult in ((ndim - 2, 8), (ndim - 1, 128)):
        if blk_in[i] != shape[i] and blk_in[i] % mult != 0:
            blk_in[i] = shape[i]
            blk_out[inv[i]] = shape[i]

    # Grow the lane tile toward the block-byte target now that all other
    # block dims are final (keeps per-step DMA large -> amortizes the
    # per-grid-step overhead; biggest win on v7x's 3.2 TB/s HBM).
    if blk_out[ndim - 1] < out_shape[ndim - 1]:
        rows = max(1, math.prod(blk_out) // blk_out[ndim - 1])
        want = (_TARGET_BLOCK_BYTES // max(1, rows * itemsize)) // 128 * 128
        if want >= out_shape[ndim - 1]:
            blk_out[ndim - 1] = out_shape[ndim - 1]
        elif want > blk_out[ndim - 1]:
            blk_out[ndim - 1] = want
        blk_in[dim[ndim - 1]] = blk_out[ndim - 1]

    blk_in = tuple(blk_in)
    blk_out = tuple(blk_out)

    # ---- generation-aware VMEM budget guard --------------------------------
    budget = max(16 << 20, _vmem_capacity_bytes() - _VMEM_HEADROOM)
    block_bytes = (math.prod(blk_in) + math.prod(blk_out)) * itemsize
    need = 3 * block_bytes  # 2x double-buffered in/out + transpose temp slack
    if need > budget:
        return None
    vmem_limit = int(min(budget, max(32 << 20, need)))

    grid = tuple(pl.cdiv(out_shape[o], blk_out[o]) for o in range(ndim))

    def out_index_map(*idx):
        return idx

    def in_index_map(*idx):
        return tuple(idx[inv[i]] for i in range(ndim))

    # Index-map-only fast path: every non-unit block axis keeps its relative
    # order -> the resident block needs no in-register transpose at all.
    nonunit_in = [i for i in range(ndim) if blk_in[i] > 1]
    nonunit_out = [dim[o] for o in range(ndim) if blk_out[o] > 1]
    if blk_in == blk_out and nonunit_in == nonunit_out:
        kernel = _copy_kernel
    else:
        kernel = _make_transpose_kernel(dim)

    return pl.pallas_call(
        kernel,
        out_shape=jax.ShapeDtypeStruct(out_shape, x.dtype),
        grid=grid,
        in_specs=[pl.BlockSpec(blk_in, in_index_map)],
        out_specs=pl.BlockSpec(blk_out, out_index_map),
        compiler_params=pltpu.CompilerParams(
            dimension_semantics=("parallel",) * ndim,
            vmem_limit_bytes=vmem_limit,
        ),
        cost_estimate=pl.CostEstimate(
            flops=0,
            transcendentals=0,
            bytes_accessed=2 * x.size * itemsize,
        ),
    )(x)


def permute_pallas(x, dim, *, force_pallas=False):
    """Pallas equivalent of `torch.Tensor.permute(dim)`."""
    ndim = x.ndim
    dim = tuple(int(d) % ndim for d in dim)
    assert sorted(dim) == list(range(ndim)), "dim must be a permutation of axes"
    out_shape = tuple(x.shape[d] for d in dim)

    # Identity permutation: nothing to do.
    if dim == tuple(range(ndim)):
        return x

    # Small-input fallback: a fused XLA transpose beats a standalone kernel.
    if not force_pallas and x.size * x.dtype.itemsize <= _small_bytes_threshold():
        return jnp.transpose(x, dim)

    # Collapse size-1 axes and contiguous in-order runs (free reshapes).
    new_shape, new_dim = _simplify_permutation(x.shape, dim)
    if len(new_dim) <= 1 or new_dim == tuple(range(len(new_dim))):
        # Only size-1 axes move: the permute is a pure row-major reshape.
        return x.reshape(out_shape)

    result = _permute_core(x.reshape(new_shape), new_dim)
    if result is None:
        # Block footprint exceeded the VMEM budget (forced-full-extent axis).
        return jnp.transpose(x, dim)
    return result.reshape(out_shape)


class PermutePallas:
    """Drop-in analogue of the PyTorch `Permute` module."""

    def __init__(self, dim):
        self.dim = tuple(dim)

    def __call__(self, x):
        return permute_pallas(x, self.dim)


if __name__ == "__main__":
    key = jax.random.PRNGKey(0)
    k1, k2, k3, k4, k5 = jax.random.split(key, 5)

    # 1) Primary case (matches the module usage): 4-D permutation that moves
    #    the channel axis to the end.  Exercises axis-run merging
    #    ((2,4,16,16)->(2,4,256)) and the tiled transpose path.
    x1 = jax.random.normal(k1, (2, 4, 16, 16), dtype=jnp.float32)
    mod = PermutePallas((0, 2, 3, 1))
    y1 = jax.block_until_ready(permute_pallas(x1, (0, 2, 3, 1), force_pallas=True))
    ref1 = jnp.transpose(x1, (0, 2, 3, 1))
    assert y1.shape == ref1.shape and y1.dtype == ref1.dtype
    assert bool(jnp.all(y1 == ref1))
    y1d = jax.block_until_ready(mod(x1))          # default path (small -> fused)
    assert bool(jnp.all(y1d == ref1))

    # 2) Conformer NCT -> NTC at toy size: default path is the fused fallback;
    #    also force the Pallas path and check both.
    x2 = jax.random.normal(k2, (2, 32, 16), dtype=jnp.float32)
    ref2 = jnp.transpose(x2, (0, 2, 1))
    y2d = jax.block_until_ready(permute_pallas(x2, (0, 2, 1)))
    assert bool(jnp.all(y2d == ref2))
    y2p = jax.block_until_ready(permute_pallas(x2, (0, 2, 1), force_pallas=True))
    assert bool(jnp.all(y2p == ref2))

    # 3) Leading-axes-only permutation: run-merging collapses (64,256)->16384
    #    and the lane tile grows to the full merged axis.
    x3 = jax.random.normal(k3, (3, 2, 64, 256), dtype=jnp.float32)
    y3 = jax.block_until_ready(permute_pallas(x3, (1, 0, 2, 3), force_pallas=True))
    ref3 = jnp.transpose(x3, (1, 0, 2, 3))
    assert y3.shape == ref3.shape
    assert bool(jnp.all(y3 == ref3))

    # 4) Plain 2-D transpose (full-block, single grid step).
    x4 = jax.random.normal(k4, (256, 384), dtype=jnp.float32)
    y4 = jax.block_until_ready(permute_pallas(x4, (1, 0), force_pallas=True))
    ref4 = jnp.transpose(x4, (1, 0))
    assert y4.shape == ref4.shape
    assert bool(jnp.all(y4 == ref4))

    # 5) Moderate NCT -> NTC taking the default Pallas path: multi-step grid
    #    with ragged (non-multiple) blocks along the tiled sublane axis.
    x5 = jax.random.normal(k5, (2, 700, 1200), dtype=jnp.float32)
    y5 = jax.block_until_ready(permute_pallas(x5, (0, 2, 1)))
    ref5 = jnp.transpose(x5, (0, 2, 1))
    assert y5.shape == ref5.shape
    assert bool(jnp.all(y5 == ref5))

    print("KERNEL_OK")
</pallas_src>

<mosaic_0001>
module attributes {stable_mosaic.version = 11 : i64} {
  func.func @kernel(%arg0: i32, %arg1: i32, %arg2: i32, %arg3: memref<1x4x256xf32, #tpu.memory_space<vmem>>, %arg4: memref<1x256x4xf32, #tpu.memory_space<vmem>>) attributes {dimension_semantics = [#tpu.dimension_semantics<parallel>, #tpu.dimension_semantics<parallel>, #tpu.dimension_semantics<parallel>], iteration_bounds = array<i64: 2, 1, 1>, scalar_prefetch = 0 : i64, scratch_operands = 0 : i64, tpu.core_type = #tpu.core_type<tc>, window_params = [{transform_indices = @transform_0, window_bounds = array<i64: 1, 4, 256>}, {transform_indices = @transform_1, window_bounds = array<i64: 1, 256, 4>}]} {
    %c0 = arith.constant 0 : index
    %c0_0 = arith.constant 0 : index
    %c0_1 = arith.constant 0 : index
    %0 = vector.load %arg3[%c0, %c0_0, %c0_1] : memref<1x4x256xf32, #tpu.memory_space<vmem>>, vector<1x4x256xf32>
    %1 = tpu.transpose %0, [0, 2, 1] : vector<1x4x256xf32> -> vector<1x256x4xf32>
    %c0_2 = arith.constant 0 : index
    %c0_3 = arith.constant 0 : index
    %c0_4 = arith.constant 0 : index
    %2 = vector.load %arg4[%c0_2, %c0_3, %c0_4] : memref<1x256x4xf32, #tpu.memory_space<vmem>>, vector<1x256x4xf32>
    tpu.vector_store %arg4[%c0_2, %c0_3, %c0_4], %1 {strides = array<i32>} : memref<1x256x4xf32, #tpu.memory_space<vmem>>, vector<1x256x4xf32>,
    return
  }
  func.func @transform_0(%arg0: i32, %arg1: i32, %arg2: i32) -> (i32, i32, i32) {
    %c0_i32 = arith.constant 0 : i32
    return %arg0, %arg2, %arg1 : i32, i32, i32
  }
  func.func @transform_1(%arg0: i32, %arg1: i32, %arg2: i32) -> (i32, i32, i32) {
    %c0_i32 = arith.constant 0 : i32
    return %arg0, %arg1, %arg2 : i32, i32, i32
  }
}

</mosaic_0001>

<bundles_post_ra>
// kernel: tpu_custom_call.1
= control target key start
LH: loop header
LB: loop body
LE: loop exit
PB: predicated region body
PF: predicated region fallthrough
CT: control target
= control target key end

     0   :  { %6 = vsyncpa [#allocation3], 0  ;;  %s749_s0 = inlined_call_operand.hbm [shape: f32[2,4,256], index: 0, kind: input, shape index: {}]   ;;  %s750_s1 = inlined_call_operand.vmem [shape: f32[2,256,4], index: 1, kind: output, shape index: {}]  }
   0x1   :  { %8 = vsyncpa [#allocation3 + $0x1], 0  ;;  %s558_s6 = smov 0   ;;  %s560_s7 = smov 0  }
   0x2   :  { %s562_s8 = smov 0   ;;  %s564_s9 = smov 0  }
   0x3   :  { %s566_s10 = smov 0   ;;  %s568_s11 = smov 0  }
   0x4 LB: > { %s393_s12 = sadd.s32 4294967295, %s545_s11   ;;  %s33_s13 = sadd.s32 1, %s541_s10  ;;  %s545_s11 = sphi %s568_s11, %s14_s11   ;;  %s541_s10 = sphi %s566_s10, %s760_s10   ;;  %s537_s9 = sphi %s564_s9, %s759_s9   ;;  %s533_s8 = sphi %s562_s8, %s758_s8   ;;  %s529_s7 = sphi %s560_s7, %s757_s7   ;;  %s525_s6 = sphi %s558_s6, %s756_s6  }
   0x5   : > { %p35_p0 = scmp.ge.s32.totalorder %s33_s13, 2  ;;  %s44_s14 = sadd.s32 1, %s533_s8 }
   0x6   : > { %p51_p1 = scmp.ne.s32.totalorder %s533_s8, %s529_s7  ;;  %p52_p2 = scmp.eq.s32.totalorder %s545_s11, 0 }
   0x7   : > { %s762_s13 = smov (%p35_p0, %s33_s13), 0  ;;  %p57_p4 = scmp.ne.s32.totalorder %s529_s7, %s525_s6 }
   0x8   : > { %p594_p3 = por %p52_p2, %p51_p1  ;;  %s37_s16 = ssub.s32 %s541_s10, %s762_s13 }
   0x9   : > { %p58_p5 = scmp.eq.s32.totalorder %s393_s12, 0  ;;  %p42_p6 = scmp.eq.s32.totalorder %s37_s16, 0 }
   0xa   : > { %p414_p8 = scmp.lt.s32.totalorder %s545_s11, 2  ;;  %s111_s19 = sand.u32 1, %s533_s8  }
   0xb   : > { %p601_p7 = por %p58_p5, %p57_p4  ;;  %s406_s20 = sshll.u32 %s541_s10, 7 }
   0xc   : > { %s607_s18 = scalar_select %p42_p6, %s533_s8, %s44_s14  }
   0xd   : > { %s397_s21 = sshll.u32 %s111_s19, 3  ;;  %s614_s24 = scalar_lea.hbm %s749_s0, %s406_s20 }
   0xe   : > { %s115_s25 = scalar_lea.vmem [#allocation2], %s397_s21  ;;  %p618_p9 = pnand %p414_p8, %p594_p3 }
   0xf   : > { %s127_s26 = sshll.u32 %s115_s25, 4  ;;  %s112_s28 = scalar_lea.sflag [#allocation3], %s111_s19  ;;  %s622_s26 = int_to_ptr.vmem [resolvable:$true] %s127_s26 }
  0x10   : > { %s465_s29 = scalar_lea.hbm %s614_s24, 128  ;;  %p467_p13 = pneg %p618_p9 }
  0x11   : > { %p466_p12 = scmp.ne.s32.totalorder %s614_s24, %s465_s29  ;;  %s470_s3 = scalar_lea.hbm %s749_s0, 256 }
  0x12   : > { %p471_p2 = scmp.lt.u32.totalorder %s614_s24, %s749_s0  ;;  %p472_p3 = scmp.lt.u32.totalorder %s470_s3, %s465_s29 }
  0x13   : > { %p468_p0 = pnand %p467_p13, %p466_p12  ;;  %p474_p5 = scmp.lt.u32.totalorder %s465_s29, %s614_s24 }
  0x14   : > { %p473_p4 = por %p472_p3, %p471_p2 }
  0x15   : > { %p469_p1 = pneg %p468_p0 }
  0x16   : > { %p475_p6 = por %p474_p5, %p473_p4 }
  0x18   : > { %p476_p8 = pnand %p475_p6, %p469_p1 }
  0x1a   : > { %479 = shalt.err (!%p476_p8)
}
  0x1b   : > { %s480_s6 = scalar_lea.vmem %s622_s26, 128  ;;  %s547_s12 = smov [#allocation2]  }
  0x1c   : > { %p481_p12 = scmp.ne.s32.totalorder %s622_s26, %s480_s6  ;;  %s485_s14 = sshll.u32 %s547_s12, 4  ;;  %s486_s14 = int_to_ptr.vmem [resolvable:$false] %s485_s14 }
  0x1d   : > { %s487_s15 = scalar_lea.vmem %s486_s14, 256  ;;  %p488_p11 = scmp.lt.s32.totalorder %s622_s26, %s486_s14 }
  0x1e   : > { %p483_p0 = pnand %p481_p12, %p467_p13  ;;  %p489_p2 = scmp.lt.s32.totalorder %s487_s15, %s480_s6 }
  0x20   : > { %p484_p10 = pneg %p483_p0  ;;  %p490_p3 = por %p489_p2, %p488_p11 }
  0x22   : > { %p491_p4 = pnand %p490_p3, %p484_p10 }
  0x24   : > { %494 = shalt.err (!%p491_p4)
}
  0x25   : > { %413 = dma.hbm_to_vmem [thread:$0]  (!%p618_p9), %s614_s24, 128, %s622_s26, %s112_s28  }
  0x26   : > { %p754_p1 = scmp.lt.s32.totalorder %s545_s11, 3  ;;  %p755_p5 = scmp.ge.s32.totalorder %s545_s11, 1 }
  0x28   : > { %p133_p13 = pnand %p755_p5, %p754_p1 }
  0x29   : > { %s138_s16 = sand.u32 (!%p133_p13), 1, %s529_s7  }
  0x2a   : > { %136 = sbr.rel (%p133_p13) target bundleno = 305 (0x131), region = 24  ;;  %s401_s19 = sshll.u32 (!%p133_p13), %s138_s16, 3 }
  0x2b   : > { %s139_s20 = scalar_lea.sflag (!%p133_p13), [#allocation3], %s138_s16  ;;  %s142_s21 = scalar_lea.vmem (!%p133_p13), [#allocation2], %s401_s19 }
  0x31   : > { %520 = dma.done.wait (%p601_p7), %s139_s20, 128  }
  0x32   : > { %522 = vsyncadd (%p601_p7), %s139_s20, 4294967168  ;;  %v182_v0 = vld [vmem:[%s142_s21] sm:$0xff]  ;;  %p170_p9 = scmp.lt.s32.totalorder %s537_s9, 1  ;;  %vm250_vm0 = vcmask 31744  }
  0x33   : > { %186 = vxpose.xlu0.b32.start.end [1/1] (short) %v182_v0, 128  ;;  %v184_v1 = vcombine.high %v182_v0, %v182_v0 }
  0x34   : > { %s764_s9 = smov (!%p170_p9, %s537_s9), 1 }
  0x35   : > { %s407_s22 = sshll.u32 %s764_s9, 8 }
  0x36   : > { %s665_s25 = scalar_lea.vmem %s750_s1, %s407_s22 }
  0x70   : > { %218 = vxpose.xlu0.b32.start.end [1/1] (short) %v184_v1, 128 }
  0xb3   : > { %v202_v2 = vpop.trf.xlu0 }
  0xb4   : > { %251 = vst.msk [vmem:[%s665_s25] sm:$0xff] %vm250_vm0, %v202_v2 }
  0xb7   : > { %v203_v3 = vpop.trf.xlu0 }
  0xb8   : > { %252 = vst.msk [vmem:[%s665_s25 + $0x8] sm:$0xff] %vm250_vm0, %v203_v3 }
  0xbb   : > { %v204_v4 = vpop.trf.xlu0 }
  0xbc   : > { %253 = vst.msk [vmem:[%s665_s25 + $0x10] sm:$0xff] %vm250_vm0, %v204_v4 }
  0xbf   : > { %v205_v5 = vpop.trf.xlu0 }
  0xc0   : > { %254 = vst.msk [vmem:[%s665_s25 + $0x18] sm:$0xff] %vm250_vm0, %v205_v5 }
  0xc3   : > { %v206_v6 = vpop.trf.xlu0 }
  0xc4   : > { %255 = vst.msk [vmem:[%s665_s25 + $0x20] sm:$0xff] %vm250_vm0, %v206_v6 }
  0xc7   : > { %v207_v7 = vpop.trf.xlu0 }
  0xc8   : > { %256 = vst.msk [vmem:[%s665_s25 + $0x28] sm:$0xff] %vm250_vm0, %v207_v7 }
  0xcb   : > { %v208_v8 = vpop.trf.xlu0 }
  0xcc   : > { %257 = vst.msk [vmem:[%s665_s25 + $0x30] sm:$0xff] %vm250_vm0, %v208_v8 }
  0xcf   : > { %v209_v9 = vpop.trf.xlu0 }
  0xd0   : > { %258 = vst.msk [vmem:[%s665_s25 + $0x38] sm:$0xff] %vm250_vm0, %v209_v9 }
  0xd3   : > { %v210_v10 = vpop.trf.xlu0 }
  0xd4   : > { %259 = vst.msk [vmem:[%s665_s25 + $0x40] sm:$0xff] %vm250_vm0, %v210_v10 }
  0xd7   : > { %v211_v11 = vpop.trf.xlu0 }
  0xd8   : > { %260 = vst.msk [vmem:[%s665_s25 + $0x48] sm:$0xff] %vm250_vm0, %v211_v11 }
  0xdb   : > { %v212_v12 = vpop.trf.xlu0 }
  0xdc   : > { %261 = vst.msk [vmem:[%s665_s25 + $0x50] sm:$0xff] %vm250_vm0, %v212_v12 }
  0xdf   : > { %v213_v13 = vpop.trf.xlu0 }
  0xe0   : > { %262 = vst.msk [vmem:[%s665_s25 + $0x58] sm:$0xff] %vm250_vm0, %v213_v13 }
  0xe3   : > { %v214_v14 = vpop.trf.xlu0 }
  0xe4   : > { %263 = vst.msk [vmem:[%s665_s25 + $0x60] sm:$0xff] %vm250_vm0, %v214_v14 }
  0xe7   : > { %v215_v15 = vpop.trf.xlu0 }
  0xe8   : > { %264 = vst.msk [vmem:[%s665_s25 + $0x68] sm:$0xff] %vm250_vm0, %v215_v15 }
  0xeb   : > { %v216_v16 = vpop.trf.xlu0 }
  0xec   : > { %265 = vst.msk [vmem:[%s665_s25 + $0x70] sm:$0xff] %vm250_vm0, %v216_v16 }
  0xef   : > { %v217_v17 = vpop.trf.xlu0 }
  0xf0   : > { %266 = vst.msk [vmem:[%s665_s25 + $0x78] sm:$0xff] %vm250_vm0, %v217_v17 }
  0xf3   : > { %v234_v18 = vpop.trf.xlu0 }
  0xf4   : > { %267 = vst.msk [vmem:[%s665_s25 + $0x80] sm:$0xff] %vm250_vm0, %v234_v18 }
  0xf7   : > { %v235_v19 = vpop.trf.xlu0 }
  0xf8   : > { %268 = vst.msk [vmem:[%s665_s25 + $0x88] sm:$0xff] %vm250_vm0, %v235_v19 }
  0xfb   : > { %v236_v20 = vpop.trf.xlu0 }
  0xfc   : > { %269 = vst.msk [vmem:[%s665_s25 + $0x90] sm:$0xff] %vm250_vm0, %v236_v20 }
  0xff   : > { %v237_v21 = vpop.trf.xlu0 }
 0x100   : > { %270 = vst.msk [vmem:[%s665_s25 + $0x98] sm:$0xff] %vm250_vm0, %v237_v21 }
 0x103   : > { %v238_v22 = vpop.trf.xlu0 }
 0x104   : > { %271 = vst.msk [vmem:[%s665_s25 + $0xa0] sm:$0xff] %vm250_vm0, %v238_v22 }
 0x107   : > { %v239_v23 = vpop.trf.xlu0 }
 0x108   : > { %272 = vst.msk [vmem:[%s665_s25 + $0xa8] sm:$0xff] %vm250_vm0, %v239_v23 }
 0x10b   : > { %v240_v24 = vpop.trf.xlu0 }
 0x10c   : > { %273 = vst.msk [vmem:[%s665_s25 + $0xb0] sm:$0xff] %vm250_vm0, %v240_v24 }
 0x10f   : > { %v241_v25 = vpop.trf.xlu0 }
 0x110   : > { %274 = vst.msk [vmem:[%s665_s25 + $0xb8] sm:$0xff] %vm250_vm0, %v241_v25 }
 0x113   : > { %v242_v26 = vpop.trf.xlu0 }
 0x114   : > { %275 = vst.msk [vmem:[%s665_s25 + $0xc0] sm:$0xff] %vm250_vm0, %v242_v26 }
 0x117   : > { %v243_v27 = vpop.trf.xlu0 }
 0x118   : > { %276 = vst.msk [vmem:[%s665_s25 + $0xc8] sm:$0xff] %vm250_vm0, %v243_v27 }
 0x11b   : > { %v244_v28 = vpop.trf.xlu0 }
 0x11c   : > { %277 = vst.msk [vmem:[%s665_s25 + $0xd0] sm:$0xff] %vm250_vm0, %v244_v28 }
 0x11f   : > { %v245_v29 = vpop.trf.xlu0 }
 0x120   : > { %278 = vst.msk [vmem:[%s665_s25 + $0xd8] sm:$0xff] %vm250_vm0, %v245_v29 }
 0x123   : > { %v246_v30 = vpop.trf.xlu0 }
 0x124   : > { %279 = vst.msk [vmem:[%s665_s25 + $0xe0] sm:$0xff] %vm250_vm0, %v246_v30 }
 0x127   : > { %v247_v31 = vpop.trf.xlu0 }
 0x128   : > { %280 = vst.msk [vmem:[%s665_s25 + $0xe8] sm:$0xff] %vm250_vm0, %v247_v31 }
 0x12b   : > { %v248_v32 = vpop.trf.xlu0 }
 0x12c   : > { %281 = vst.msk [vmem:[%s665_s25 + $0xf0] sm:$0xff] %vm250_vm0, %v248_v32 }
 0x12f   : > { %v249_v33 = vpop.trf.xlu0 }
 0x130   : > { %282 = vst.msk [vmem:[%s665_s25 + $0xf8] sm:$0xff] %vm250_vm0, %v249_v33 }
 0x131 PF: > { %s14_s11 = sadd.s32 1, %s545_s11   ;;  %s756_s6 = smov %s529_s7 }
 0x132   : > { %p11_p7 = scmp.ge.s32.totalorder %s14_s11, 4   ;;  %s757_s7 = smov %s533_s8 }
 0x133   : > { %s758_s8 = smov %s607_s18  ;;  %s759_s9 = smov %s541_s10 }
 0x134   : > { %s760_s10 = smov %s762_s13  ;;  %13 = sbr.rel (!%p11_p7) target bundleno = 4 (0x4), region = 64 }
 0x13b   :  { %319 = vsyncpa [#allocation3], 1 }
 0x13c   :  { %321 = vsyncpa [#allocation3 + $0x1], 1 }

</bundles_post_ra>
